<compile_context>
chip_gen: v7x
topology: tpu7x:2x2x1
jax: 0.10.0
libtpu: 0.0.40
codegen_flags: <defaults>
</compile_context>

<pallas_src>
import jax
import jax.numpy as jnp
from jax.experimental import pallas as pl
from jax.experimental.pallas import tpu as pltpu

N_CLASS = 2
INIT_DIM = 32
D0 = N_CLASS            # 2
D1 = INIT_DIM * 4       # 128
D2 = INIT_DIM * 2       # 64
D3 = INIT_DIM           # 32
D4 = INIT_DIM // 2      # 16
BN_EPS = 1e-5
_ROW_ALIGN = 8          # f32 sublane granularity


def _round_up(n, m):
    return ((n + m - 1) // m) * m


def _ppmodel_out_kernel(
    x_ref, r3_ref, r2_ref, r1_ref,
    wx_ref, bc_ref,          # folded input-Linear (into layer1's output space)
    w1_ref,                  # layer1 weight, BN folded, bf16 (acts on r3)
    w2_ref, b2_ref,
    w3_ref, b3_ref,
    w_out_ref, b_out_ref,
    o_ref,
):
    x = x_ref[...]                              # (tm, 2)  f32

    # ---- layer1, with the K=2 input Linear algebraically folded in ----
    #   relu( (x@Win + bin + r3) @ W1f + B1f )
    # = relu( r3 @ W1f  +  x @ (Win@W1f)  +  (bin@W1f + B1f) )
    h = jnp.dot(r3_ref[...].astype(jnp.bfloat16), w1_ref[...],
                preferred_element_type=jnp.float32)        # (tm, 64) f32
    h = h + (x[:, 0:1] * wx_ref[0:1, :]
             + x[:, 1:2] * wx_ref[1:2, :]
             + bc_ref[...])
    h = jnp.maximum(h, 0.0)

    # ---- layer2 (BN folded); dropout(eval) = identity ----
    h = (h + r2_ref[...]).astype(jnp.bfloat16)
    h = jnp.dot(h, w2_ref[...], preferred_element_type=jnp.float32) + b2_ref[...]
    h = jnp.maximum(h, 0.0)

    # ---- layer3 ----
    h = (h + r1_ref[...]).astype(jnp.bfloat16)
    h = jnp.dot(h, w3_ref[...], preferred_element_type=jnp.float32) + b3_ref[...]
    h = jnp.maximum(h, 0.0)

    # ---- self.out ----
    o = jnp.dot(h.astype(jnp.bfloat16), w_out_ref[...],
                preferred_element_type=jnp.float32) + b_out_ref[...]
    o_ref[...] = o.astype(o_ref.dtype)


def fold_params(params):
    """Fold BN (running-stat) scale/shift into the preceding Linear, fold the
    K=2 input Linear into layer1 (all folds in f32), and cast the MXU weights
    to bf16 (biases stay f32)."""
    (w_in, b_in, w1, b1, s1, t1, w2, b2, s2, t2,
     w3, b3, s3, t3, w_out, b_out) = params

    # BN folds (f32).
    w1f = w1 * s1
    b1f = b1 * s1 + t1
    w2f = w2 * s2
    b2f = b2 * s2 + t2
    w3f = w3 * s3
    b3f = b3 * s3 + t3

    # Fold the input Linear (2 -> 128) through layer1 (128 -> 64):
    #   (x@Win + bin + r3) @ W1f + B1f = r3@W1f + x@(Win@W1f) + (bin@W1f + B1f)
    wx = w_in @ w1f                      # (2, 64)  f32
    bc = b_in @ w1f + b1f                # (1, 64)  f32

    return (wx.astype(jnp.float32), bc.astype(jnp.float32),
            w1f.astype(jnp.bfloat16),
            w2f.astype(jnp.bfloat16), b2f.astype(jnp.float32),
            w3f.astype(jnp.bfloat16), b3f.astype(jnp.float32),
            w_out.astype(jnp.bfloat16), b_out.astype(jnp.float32))


def ppmodel_out(x, r1, r2, r3, params, *, tm=4096):
    """x: (N, D0), r1: (N, D3), r2: (N, D2), r3: (N, D1) -> (N, D0) f32.

    Residuals are consumed as-is (f32) — no wrapper cast/pad passes.
    """
    N = x.shape[0]

    # Row tile: multiple of 8; capped at (roughly) half the batch so the
    # "parallel" grid axis always has >= 2 steps and both v7x TensorCores
    # get work.  Ragged tail handled by Pallas (OOB output rows dropped).
    tm_eff = max(_ROW_ALIGN, (tm // _ROW_ALIGN) * _ROW_ALIGN)
    half_n = _round_up(-(-N // 2), _ROW_ALIGN)
    tm_eff = min(tm_eff, max(_ROW_ALIGN, half_n))
    grid = pl.cdiv(N, tm_eff)

    folded = fold_params(params)
    (wx, bc, w1, w2, b2, w3, b3, w_out, b_out) = folded

    def row_spec(c):
        return pl.BlockSpec((tm_eff, c), lambda i: (i, 0))

    def full_spec(shape):
        return pl.BlockSpec(shape, lambda i: tuple(0 for _ in shape))

    in_specs = [
        row_spec(D0),            # return_pt_fea
        row_spec(D1),            # res_pt_fea3
        row_spec(D2),            # res_pt_fea2
        row_spec(D3),            # res_pt_fea1
        full_spec(wx.shape), full_spec(bc.shape),
        full_spec(w1.shape),
        full_spec(w2.shape), full_spec(b2.shape),
        full_spec(w3.shape), full_spec(b3.shape),
        full_spec(w_out.shape), full_spec(b_out.shape),
    ]

    out = pl.pallas_call(
        _ppmodel_out_kernel,
        out_shape=jax.ShapeDtypeStruct((N, D0), jnp.float32),
        grid_spec=pltpu.PrefetchScalarGridSpec(
            num_scalar_prefetch=0,
            grid=(grid,),
            in_specs=in_specs,
            out_specs=row_spec(D0),
        ),
        compiler_params=pltpu.CompilerParams(
            dimension_semantics=("parallel",),
            vmem_limit_bytes=32 * 1024 * 1024,
        ),
    )(x.astype(jnp.float32), r3, r2, r1,
      wx, bc, w1, w2, b2, w3, b3, w_out, b_out)

    return out


def init_params(key):
    """Parameters mirroring the PyTorch module's shapes.

    Linear: weight (out, in) kaiming-uniform-ish -> stored transposed (in, out);
    BatchNorm1d: random gamma/beta/running stats (so the BN fold is actually
    exercised), pre-reduced to scale = gamma/sqrt(var+eps),
    shift = beta - mean*scale.
    """
    ks = jax.random.split(key, 22)

    def linear(kw, kb, d_in, d_out):
        bound = 1.0 / jnp.sqrt(d_in)
        w = jax.random.uniform(kw, (d_in, d_out), jnp.float32, -bound, bound)
        b = jax.random.uniform(kb, (1, d_out), jnp.float32, -bound, bound)
        return w, b

    def bn_fold(kg, kb, km, kv, c):
        gamma = jax.random.uniform(kg, (1, c), jnp.float32, 0.5, 1.5)
        beta = 0.1 * jax.random.normal(kb, (1, c), jnp.float32)
        rmean = 0.1 * jax.random.normal(km, (1, c), jnp.float32)
        rvar = jax.random.uniform(kv, (1, c), jnp.float32, 0.5, 1.5)
        scale = gamma / jnp.sqrt(rvar + BN_EPS)
        shift = beta - rmean * scale
        return scale, shift

    w_in, b_in = linear(ks[0], ks[1], D0, D1)
    w1, b1 = linear(ks[2], ks[3], D1, D2)
    s1, t1 = bn_fold(ks[4], ks[5], ks[6], ks[7], D2)
    w2, b2 = linear(ks[8], ks[9], D1 // 2, D3)
    s2, t2 = bn_fold(ks[10], ks[11], ks[12], ks[13], D3)
    w3, b3 = linear(ks[14], ks[15], D3, D4)
    s3, t3 = bn_fold(ks[16], ks[17], ks[18], ks[19], D4)
    w_out, b_out = linear(ks[20], ks[21], D4, D0)
    return (w_in, b_in, w1, b1, s1, t1, w2, b2, s2, t2,
            w3, b3, s3, t3, w_out, b_out)


def reference(x, r1, r2, r3, params):
    """Full f32, unfolded-BN reference (module semantics, eval mode)."""
    (w_in, b_in, w1, b1, s1, t1, w2, b2, s2, t2,
     w3, b3, s3, t3, w_out, b_out) = params
    h = x @ w_in + b_in
    h = jnp.maximum(((h + r3) @ w1 + b1) * s1 + t1, 0.0)
    h = jnp.maximum(((h + r2) @ w2 + b2) * s2 + t2, 0.0)
    h = jnp.maximum(((h + r1) @ w3 + b3) * s3 + t3, 0.0)
    return h @ w_out + b_out


def reference_matched(x, r1, r2, r3, folded):
    """Plain-JAX replica of the kernel's exact math / dtype plan (bf16
    weights + in-kernel bf16 casts, f32 accumulation, folded input layer)."""
    (wx, bc, w1, w2, b2, w3, b3, w_out, b_out) = folded
    x = x.astype(jnp.float32)
    h = jnp.dot(r3.astype(jnp.bfloat16), w1, preferred_element_type=jnp.float32)
    h = h + (x[:, 0:1] * wx[0:1, :] + x[:, 1:2] * wx[1:2, :] + bc)
    h = jnp.maximum(h, 0.0)
    h = (h + r2).astype(jnp.bfloat16)
    h = jnp.maximum(jnp.dot(h, w2, preferred_element_type=jnp.float32) + b2, 0.0)
    h = (h + r1).astype(jnp.bfloat16)
    h = jnp.maximum(jnp.dot(h, w3, preferred_element_type=jnp.float32) + b3, 0.0)
    return jnp.dot(h.astype(jnp.bfloat16), w_out,
                   preferred_element_type=jnp.float32) + b_out


if __name__ == "__main__":
    key = jax.random.PRNGKey(0)
    k_param, k_x, k_r1, k_r2, k_r3 = jax.random.split(key, 5)

    # Small, deliberately tile-unaligned batch: exercises the ragged tail
    # block and the >=2-step parallel grid.
    N = 100
    params = init_params(k_param)

    x = jax.random.normal(k_x, (N, D0), jnp.float32)     # return_pt_fea
    r1 = jax.random.normal(k_r1, (N, D3), jnp.float32)   # res_pt_fea1
    r2 = jax.random.normal(k_r2, (N, D2), jnp.float32)   # res_pt_fea2
    r3 = jax.random.normal(k_r3, (N, D1), jnp.float32)   # res_pt_fea3

    out = ppmodel_out(x, r1, r2, r3, params)
    out = jax.block_until_ready(out)
    assert out.shape == (N, D0)

    # Tight check against a plain-JAX replica of the kernel's exact math.
    ref_matched = reference_matched(x, r1, r2, r3, fold_params(params))
    assert jnp.allclose(out, ref_matched, atol=2e-3, rtol=2e-3), \
        "mismatch vs dtype-matched reference"

    # Loose check against the full-f32 module reference (bf16 quantization).
    ref_f32 = reference(x, r1, r2, r3, params)
    assert jnp.allclose(out, ref_f32, atol=5e-2, rtol=5e-2), \
        "mismatch vs f32 reference"

    print("KERNEL_OK")
</pallas_src>

<mosaic_0001>
module attributes {stable_mosaic.version = 11 : i64} {
  func.func @_ppmodel_out_kernel(%arg0: i32, %arg1: memref<56x2xf32, #tpu.memory_space<vmem>>, %arg2: memref<56x128xf32, #tpu.memory_space<vmem>>, %arg3: memref<56x64xf32, #tpu.memory_space<vmem>>, %arg4: memref<56x32xf32, #tpu.memory_space<vmem>>, %arg5: memref<2x64xf32, #tpu.memory_space<vmem>>, %arg6: memref<1x64xf32, #tpu.memory_space<vmem>>, %arg7: memref<128x64xbf16, #tpu.memory_space<vmem>>, %arg8: memref<64x32xbf16, #tpu.memory_space<vmem>>, %arg9: memref<1x32xf32, #tpu.memory_space<vmem>>, %arg10: memref<32x16xbf16, #tpu.memory_space<vmem>>, %arg11: memref<1x16xf32, #tpu.memory_space<vmem>>, %arg12: memref<16x2xbf16, #tpu.memory_space<vmem>>, %arg13: memref<1x2xf32, #tpu.memory_space<vmem>>, %arg14: memref<56x2xf32, #tpu.memory_space<vmem>>) attributes {dimension_semantics = [#tpu.dimension_semantics<parallel>], iteration_bounds = array<i64: 2>, scalar_prefetch = 0 : i64, scratch_operands = 0 : i64, tpu.core_type = #tpu.core_type<tc>, window_params = [{transform_indices = @transform_0, window_bounds = array<i64: 56, 2>}, {transform_indices = @transform_1, window_bounds = array<i64: 56, 128>}, {transform_indices = @transform_2, window_bounds = array<i64: 56, 64>}, {transform_indices = @transform_3, window_bounds = array<i64: 56, 32>}, {pipeline_mode = #tpu.pipeline_mode<synchronous>, transform_indices = @transform_4, window_bounds = array<i64: 2, 64>}, {pipeline_mode = #tpu.pipeline_mode<synchronous>, transform_indices = @transform_5, window_bounds = array<i64: 1, 64>}, {pipeline_mode = #tpu.pipeline_mode<synchronous>, transform_indices = @transform_6, window_bounds = array<i64: 128, 64>}, {pipeline_mode = #tpu.pipeline_mode<synchronous>, transform_indices = @transform_7, window_bounds = array<i64: 64, 32>}, {pipeline_mode = #tpu.pipeline_mode<synchronous>, transform_indices = @transform_8, window_bounds = array<i64: 1, 32>}, {pipeline_mode = #tpu.pipeline_mode<synchronous>, transform_indices = @transform_9, window_bounds = array<i64: 32, 16>}, {pipeline_mode = #tpu.pipeline_mode<synchronous>, transform_indices = @transform_10, window_bounds = array<i64: 1, 16>}, {pipeline_mode = #tpu.pipeline_mode<synchronous>, transform_indices = @transform_11, window_bounds = array<i64: 16, 2>}, {pipeline_mode = #tpu.pipeline_mode<synchronous>, transform_indices = @transform_12, window_bounds = array<i64: 1, 2>}, {transform_indices = @transform_13, window_bounds = array<i64: 56, 2>}]} {
    %c0 = arith.constant 0 : index
    %c0_0 = arith.constant 0 : index
    %0 = vector.load %arg1[%c0, %c0_0] : memref<56x2xf32, #tpu.memory_space<vmem>>, vector<56x2xf32>
    %c0_1 = arith.constant 0 : index
    %c0_2 = arith.constant 0 : index
    %1 = vector.load %arg2[%c0_1, %c0_2] : memref<56x128xf32, #tpu.memory_space<vmem>>, vector<56x128xf32>
    %2 = arith.truncf %1 : vector<56x128xf32> to vector<56x128xbf16>
    %c0_3 = arith.constant 0 : index
    %c0_4 = arith.constant 0 : index
    %3 = vector.load %arg7[%c0_3, %c0_4] : memref<128x64xbf16, #tpu.memory_space<vmem>>, vector<128x64xbf16>
    %cst = arith.constant dense<0.000000e+00> : vector<56x64xf32>
    %4 = tpu.matmul %2, %3, %cst {dimension_numbers = #tpu.dot_dimension_numbers<[1], [0], [0], [1], [0, 0, 1, 1], [], []>} : vector<56x128xbf16>, vector<128x64xbf16>, vector<56x64xf32> -> vector<56x64xf32>
    %5 = vector.extract_strided_slice %0 {offsets = [0, 0], sizes = [56, 1], strides = [1, 1]} : vector<56x2xf32> to vector<56x1xf32>
    %c0_5 = arith.constant 0 : index
    %c0_6 = arith.constant 0 : index
    %6 = vector.load %arg5[%c0_5, %c0_6] : memref<2x64xf32, #tpu.memory_space<vmem>>, vector<1x64xf32>
    %7 = vector.broadcast %5 : vector<56x1xf32> to vector<56x64xf32>
    %8 = vector.broadcast %6 : vector<1x64xf32> to vector<56x64xf32>
    %9 = arith.mulf %7, %8 : vector<56x64xf32>
    %10 = vector.extract_strided_slice %0 {offsets = [0, 1], sizes = [56, 1], strides = [1, 1]} : vector<56x2xf32> to vector<56x1xf32>
    %c1 = arith.constant 1 : index
    %c0_7 = arith.constant 0 : index
    %11 = vector.load %arg5[%c1, %c0_7] : memref<2x64xf32, #tpu.memory_space<vmem>>, vector<1x64xf32>
    %12 = vector.broadcast %10 : vector<56x1xf32> to vector<56x64xf32>
    %13 = vector.broadcast %11 : vector<1x64xf32> to vector<56x64xf32>
    %14 = arith.mulf %12, %13 : vector<56x64xf32>
    %15 = arith.addf %9, %14 : vector<56x64xf32>
    %c0_8 = arith.constant 0 : index
    %c0_9 = arith.constant 0 : index
    %16 = vector.load %arg6[%c0_8, %c0_9] : memref<1x64xf32, #tpu.memory_space<vmem>>, vector<1x64xf32>
    %17 = vector.broadcast %16 : vector<1x64xf32> to vector<56x64xf32>
    %18 = arith.addf %15, %17 : vector<56x64xf32>
    %19 = arith.addf %4, %18 : vector<56x64xf32>
    %cst_10 = arith.constant 0.000000e+00 : f32
    %20 = vector.broadcast %cst_10 : f32 to vector<56x64xf32>
    %21 = arith.maximumf %19, %20 : vector<56x64xf32>
    %c0_11 = arith.constant 0 : index
    %c0_12 = arith.constant 0 : index
    %22 = vector.load %arg3[%c0_11, %c0_12] : memref<56x64xf32, #tpu.memory_space<vmem>>, vector<56x64xf32>
    %23 = arith.addf %21, %22 : vector<56x64xf32>
    %24 = arith.truncf %23 : vector<56x64xf32> to vector<56x64xbf16>
    %c0_13 = arith.constant 0 : index
    %c0_14 = arith.constant 0 : index
    %25 = vector.load %arg8[%c0_13, %c0_14] : memref<64x32xbf16, #tpu.memory_space<vmem>>, vector<64x32xbf16>
    %cst_15 = arith.constant dense<0.000000e+00> : vector<56x32xf32>
    %26 = tpu.matmul %24, %25, %cst_15 {dimension_numbers = #tpu.dot_dimension_numbers<[1], [0], [0], [1], [0, 0, 1, 1], [], []>} : vector<56x64xbf16>, vector<64x32xbf16>, vector<56x32xf32> -> vector<56x32xf32>
    %c0_16 = arith.constant 0 : index
    %c0_17 = arith.constant 0 : index
    %27 = vector.load %arg9[%c0_16, %c0_17] : memref<1x32xf32, #tpu.memory_space<vmem>>, vector<1x32xf32>
    %28 = vector.broadcast %27 : vector<1x32xf32> to vector<56x32xf32>
    %29 = arith.addf %26, %28 : vector<56x32xf32>
    %cst_18 = arith.constant 0.000000e+00 : f32
    %30 = vector.broadcast %cst_18 : f32 to vector<56x32xf32>
    %31 = arith.maximumf %29, %30 : vector<56x32xf32>
    %c0_19 = arith.constant 0 : index
    %c0_20 = arith.constant 0 : index
    %32 = vector.load %arg4[%c0_19, %c0_20] : memref<56x32xf32, #tpu.memory_space<vmem>>, vector<56x32xf32>
    %33 = arith.addf %31, %32 : vector<56x32xf32>
    %34 = arith.truncf %33 : vector<56x32xf32> to vector<56x32xbf16>
    %c0_21 = arith.constant 0 : index
    %c0_22 = arith.constant 0 : index
    %35 = vector.load %arg10[%c0_21, %c0_22] : memref<32x16xbf16, #tpu.memory_space<vmem>>, vector<32x16xbf16>
    %cst_23 = arith.constant dense<0.000000e+00> : vector<56x16xf32>
    %36 = tpu.matmul %34, %35, %cst_23 {dimension_numbers = #tpu.dot_dimension_numbers<[1], [0], [0], [1], [0, 0, 1, 1], [], []>} : vector<56x32xbf16>, vector<32x16xbf16>, vector<56x16xf32> -> vector<56x16xf32>
    %c0_24 = arith.constant 0 : index
    %c0_25 = arith.constant 0 : index
    %37 = vector.load %arg11[%c0_24, %c0_25] : memref<1x16xf32, #tpu.memory_space<vmem>>, vector<1x16xf32>
    %38 = vector.broadcast %37 : vector<1x16xf32> to vector<56x16xf32>
    %39 = arith.addf %36, %38 : vector<56x16xf32>
    %cst_26 = arith.constant 0.000000e+00 : f32
    %40 = vector.broadcast %cst_26 : f32 to vector<56x16xf32>
    %41 = arith.maximumf %39, %40 : vector<56x16xf32>
    %42 = arith.truncf %41 : vector<56x16xf32> to vector<56x16xbf16>
    %c0_27 = arith.constant 0 : index
    %c0_28 = arith.constant 0 : index
    %43 = vector.load %arg12[%c0_27, %c0_28] : memref<16x2xbf16, #tpu.memory_space<vmem>>, vector<16x2xbf16>
    %cst_29 = arith.constant dense<0.000000e+00> : vector<56x2xf32>
    %44 = tpu.matmul %42, %43, %cst_29 {dimension_numbers = #tpu.dot_dimension_numbers<[1], [0], [0], [1], [0, 0, 1, 1], [], []>} : vector<56x16xbf16>, vector<16x2xbf16>, vector<56x2xf32> -> vector<56x2xf32>
    %c0_30 = arith.constant 0 : index
    %c0_31 = arith.constant 0 : index
    %45 = vector.load %arg13[%c0_30, %c0_31] : memref<1x2xf32, #tpu.memory_space<vmem>>, vector<1x2xf32>
    %46 = vector.broadcast %45 : vector<1x2xf32> to vector<56x2xf32>
    %47 = arith.addf %44, %46 : vector<56x2xf32>
    %c0_32 = arith.constant 0 : index
    %c0_33 = arith.constant 0 : index
    %48 = vector.load %arg14[%c0_32, %c0_33] : memref<56x2xf32, #tpu.memory_space<vmem>>, vector<56x2xf32>
    tpu.vector_store %arg14[%c0_32, %c0_33], %47 {strides = array<i32>} : memref<56x2xf32, #tpu.memory_space<vmem>>, vector<56x2xf32>,
    return
  }
  func.func @transform_0(%arg0: i32) -> (i32, i32) {
    %c0_i32 = arith.constant 0 : i32
    %c0_i32_0 = arith.constant 0 : i32
    return %arg0, %c0_i32 : i32, i32
  }
  func.func @transform_1(%arg0: i32) -> (i32, i32) {
    %c0_i32 = arith.constant 0 : i32
    %c0_i32_0 = arith.constant 0 : i32
    return %arg0, %c0_i32 : i32, i32
  }
  func.func @transform_2(%arg0: i32) -> (i32, i32) {
    %c0_i32 = arith.constant 0 : i32
    %c0_i32_0 = arith.constant 0 : i32
    return %arg0, %c0_i32 : i32, i32
  }
  func.func @transform_3(%arg0: i32) -> (i32, i32) {
    %c0_i32 = arith.constant 0 : i32
    %c0_i32_0 = arith.constant 0 : i32
    return %arg0, %c0_i32 : i32, i32
  }
  func.func @transform_4(%arg0: i32) -> (i32, i32) {
    %c0_i32 = arith.constant 0 : i32
    %c0_i32_0 = arith.constant 0 : i32
    %c0_i32_1 = arith.constant 0 : i32
    return %c0_i32, %c0_i32_0 : i32, i32
  }
  func.func @transform_5(%arg0: i32) -> (i32, i32) {
    %c0_i32 = arith.constant 0 : i32
    %c0_i32_0 = arith.constant 0 : i32
    %c0_i32_1 = arith.constant 0 : i32
    return %c0_i32, %c0_i32_0 : i32, i32
  }
  func.func @transform_6(%arg0: i32) -> (i32, i32) {
    %c0_i32 = arith.constant 0 : i32
    %c0_i32_0 = arith.constant 0 : i32
    %c0_i32_1 = arith.constant 0 : i32
    return %c0_i32, %c0_i32_0 : i32, i32
  }
  func.func @transform_7(%arg0: i32) -> (i32, i32) {
    %c0_i32 = arith.constant 0 : i32
    %c0_i32_0 = arith.constant 0 : i32
    %c0_i32_1 = arith.constant 0 : i32
    return %c0_i32, %c0_i32_0 : i32, i32
  }
  func.func @transform_8(%arg0: i32) -> (i32, i32) {
    %c0_i32 = arith.constant 0 : i32
    %c0_i32_0 = arith.constant 0 : i32
    %c0_i32_1 = arith.constant 0 : i32
    return %c0_i32, %c0_i32_0 : i32, i32
  }
  func.func @transform_9(%arg0: i32) -> (i32, i32) {
    %c0_i32 = arith.constant 0 : i32
    %c0_i32_0 = arith.constant 0 : i32
    %c0_i32_1 = arith.constant 0 : i32
    return %c0_i32, %c0_i32_0 : i32, i32
  }
  func.func @transform_10(%arg0: i32) -> (i32, i32) {
    %c0_i32 = arith.constant 0 : i32
    %c0_i32_0 = arith.constant 0 : i32
    %c0_i32_1 = arith.constant 0 : i32
    return %c0_i32, %c0_i32_0 : i32, i32
  }
  func.func @transform_11(%arg0: i32) -> (i32, i32) {
    %c0_i32 = arith.constant 0 : i32
    %c0_i32_0 = arith.constant 0 : i32
    %c0_i32_1 = arith.constant 0 : i32
    return %c0_i32, %c0_i32_0 : i32, i32
  }
  func.func @transform_12(%arg0: i32) -> (i32, i32) {
    %c0_i32 = arith.constant 0 : i32
    %c0_i32_0 = arith.constant 0 : i32
    %c0_i32_1 = arith.constant 0 : i32
    return %c0_i32, %c0_i32_0 : i32, i32
  }
  func.func @transform_13(%arg0: i32) -> (i32, i32) {
    %c0_i32 = arith.constant 0 : i32
    %c0_i32_0 = arith.constant 0 : i32
    return %arg0, %c0_i32 : i32, i32
  }
}

</mosaic_0001>

<bundles_post_ra>
// kernel: tpu_custom_call.1
= control target key start
LH: loop header
LB: loop body
LE: loop exit
PB: predicated region body
PF: predicated region fallthrough
CT: control target
= control target key end

     0   :  { %s2171_s0 = inlined_call_operand.vmem [shape: f32[100,2], index: 0, kind: input, shape index: {}]   ;;  %s2172_s1 = inlined_call_operand.vmem [shape: f32[100,128], index: 1, kind: input, shape index: {}]   ;;  %s2173_s2 = inlined_call_operand.vmem [shape: f32[100,64], index: 2, kind: input, shape index: {}]   ;;  %s2174_s3 = inlined_call_operand.vmem [shape: f32[100,32], index: 3, kind: input, shape index: {}]   ;;  %s2175_s4 = inlined_call_operand.vmem [shape: f32[2,64], index: 4, kind: input, shape index: {}]   ;;  %s2176_s5 = inlined_call_operand.vmem [shape: f32[1,64], index: 5, kind: input, shape index: {}]   ;;  %s2177_s6 = inlined_call_operand.vmem [shape: bf16[128,64], index: 6, kind: input, shape index: {}]   ;;  %s2178_s7 = inlined_call_operand.vmem [shape: bf16[64,32], index: 7, kind: input, shape index: {}]   ;;  %s2179_s8 = inlined_call_operand.vmem [shape: f32[1,32], index: 8, kind: input, shape index: {}]   ;;  %s2180_s9 = inlined_call_operand.vmem [shape: bf16[32,16], index: 9, kind: input, shape index: {}]   ;;  %s2181_s10 = inlined_call_operand.vmem [shape: f32[1,16], index: 10, kind: input, shape index: {}]   ;;  %s2182_s11 = inlined_call_operand.vmem [shape: bf16[16,2], index: 11, kind: input, shape index: {}]   ;;  %s2183_s12 = inlined_call_operand.vmem [shape: f32[1,2], index: 12, kind: input, shape index: {}]   ;;  %s2184_s13 = inlined_call_operand.vmem [shape: f32[100,2], index: 13, kind: output, shape index: {}]  }
   0x1   :  { %2185 = sst [smem:[#allocation3_spill]] %s2171_s0 }
   0x2   :  { %2186 = sst [smem:[#allocation4_spill]] %s2172_s1 }
   0x3   :  { %2187 = sst [smem:[#allocation5_spill]] %s2173_s2 }
   0x4   :  { %s1926_s25 = smov 0   ;;  %s1928_s26 = smov 0  }
   0x5   :  { %s1930_s27 = smov 0  }
   0x6 LB: > { %s1939_s28 = sadd.s32 4294967295, %s1820_s27   ;;  %s1941_s29 = sadd.s32 1, %s1820_s27   ;;  %s1820_s27 = sphi %s1930_s27, %s2197_s27   ;;  %s1816_s26 = sphi %s1928_s26, %s2196_s26   ;;  %s1812_s25 = sphi %s1926_s25, %s2195_s25  }
   0x7   : > { %s320_s30 = ssub.s32 %s1820_s27, %s1941_s29  ;;  %s323_s14 = sadd.s32 1, %s1816_s26 }
   0x8   : > { %p321_p0 = scmp.eq.s32.totalorder %s320_s30, 0  ;;  %p333_p1 = scmp.ne.s32.totalorder %s1816_s26, %s1812_s25 }
   0x9   : > { %p334_p2 = scmp.eq.s32.totalorder %s1939_s28, 1  ;;  %p1500_p3 = scmp.ge.s32.totalorder %s1820_s27, 1 }
   0xa   : > { %s1949_s15 = scalar_select %p321_p0, %s1816_s26, %s323_s14  }
   0xb   : > { %p1951_p4 = por %p334_p2, %p333_p1  ;;  %p453_p5 = scmp.lt.s32.totalorder %s1820_s27, 3 }
   0xd   : > { %p454_p6 = pnand %p1500_p3, %p453_p5 }
   0xe   : > { %v1747_v0 = vld [vmem:[%s2177_s6] sm:$0xff] (!%p454_p6)   ;;  %s1959_s19 = smul.u32 (!%p454_p6), 7, %s1939_s28  ;;  %v1748_v1 = vld [vmem:[%s2177_s6 + $0x8] sm:$0xff] (!%p454_p6)   ;;  %v1854_v2 = vmov (!%p454_p6), 1   ;;  %v1749_v3 = vld [vmem:[%s2177_s6 + $0x10] sm:$0xff] (!%p454_p6)   ;;  %v1855_v4 = vmov (!%p454_p6), 0  }
   0xf   : > { %457 = sbr.rel (%p454_p6) target bundleno = 1006 (0x3ee), region = 72  ;;  %1582 = vmatprep.subr.bf16.mxu0 (!%p454_p6), %v1747_v0  ;;  %1739 = vset.pattern.permute.xlu1 (!%p454_p6), %v1854_v2  ;;  %s2189_s1 = sld [smem:[#allocation4_spill]] (!%p454_p6)  ;;  %v1750_v5 = vld [vmem:[%s2177_s6 + $0x18] sm:$0xff] (!%p454_p6)   ;;  %v1751_v10 = vld [vmem:[%s2177_s6 + $0x20] sm:$0xff] (!%p454_p6)   ;;  %v1752_v13 = vld [vmem:[%s2177_s6 + $0x28] sm:$0xff] (!%p454_p6)   ;;  %vm907_vm0 = vcmask (!%p454_p6), 523264  }
  0x10   : > { %p532_p7 = scmp.lt.s32.totalorder (!%p454_p6), %s1959_s19, 12  ;;  %1583 = vmatpush3.bf16.msra.mxu0 (!%p454_p6), %v1747_v0  ;;  %1738 = vset.pattern.permute.xlu0 (!%p454_p6), %v1855_v4  ;;  %s2190_s0 = sld [smem:[#allocation3_spill]] (!%p454_p6)  ;;  %v1753_v15 = vld [vmem:[%s2177_s6 + $0x30] sm:$0xff] (!%p454_p6)   ;;  %v1754_v16 = vld [vmem:[%s2177_s6 + $0x38] sm:$0xff] (!%p454_p6)   ;;  %v1755_v28 = vld [vmem:[%s2178_s7] sm:$0xff] (!%p454_p6)   ;;  %vm1032_vm1 = vcmask (!%p454_p6), 261120  }
  0x11   : > { %1584 = vmatprep.subr.bf16.mxu0 (!%p454_p6), %v1748_v1  ;;  %1606 = vmatprep.subr.bf16.mxu1 (!%p454_p6), %v1755_v28  ;;  %v1756_v29 = vld [vmem:[%s2178_s7 + $0x8] sm:$0xff] (!%p454_p6)   ;;  %v1757_v30 = vld [vmem:[%s2178_s7 + $0x10] sm:$0xff] (!%p454_p6)   ;;  %v1758_v31 = vld [vmem:[%s2178_s7 + $0x18] sm:$0xff] (!%p454_p6)   ;;  %s2191_s2 = sld [smem:[#allocation5_spill]] (!%p454_p6)  ;;  %vm1135_vm2 = vcmask (!%p454_p6), 130048   ;;  %vm1212_vm3 = vcmask (!%p454_p6), 15360  }
  0x12   : > { %1607 = vmatpush3.bf16.msra.mxu1 (!%p454_p6), %v1755_v28  ;;  %v2032_v32 = vld [vmem:[%s2180_s9] sm:$0xff] (!%p454_p6)  }
  0x13   : > { %1608 = vmatprep.subr.bf16.mxu1 (!%p454_p6), %v1756_v29  ;;  %v1506_v43 = vld [vmem:[%s2175_s4 + $0x1] ss:$0 sm:$0xff] (!%p454_p6)  ;;  %v1505_v44 = vld [vmem:[%s2175_s4] ss:$0 sm:$0xff] (!%p454_p6) }
  0x14   : > { %1585 = vmatpush3.bf16.msra.mxu0 (!%p454_p6), %v1748_v1  ;;  %v1507_v60 = vld [vmem:[%s2176_s5] ss:$0 sm:$0xff] (!%p454_p6) }
  0x15   : > { %1586 = vmatprep.subr.bf16.mxu0 (!%p454_p6), %v1749_v3 }
  0x16   : > { %s533_s24 = scalar_select %p532_p7, %s1959_s19, 12  ;;  %1609 = vmatpush3.bf16.msra.mxu1 %v1756_v29 }
  0x17   : > { %1610 = vmatprep.subr.bf16.mxu1 %v1757_v30 }
  0x18   : > { %s1970_s27 = sshll.u32 %s533_s24, 3  ;;  %1587 = vmatpush3.bf16.msra.mxu0 %v1749_v3 }
  0x19   : > { %s1976_s17 = scalar_lea.vmem %s2189_s1, %s1970_s27  ;;  %s1982_s21 = scalar_lea.vmem %s2190_s0, %s1970_s27  ;;  %1588 = vmatprep.subr.bf16.mxu0 %v1750_v5 }
  0x1a   : > { %v596_v6 = vld [vmem:[%s1976_s17] sm:$0xff]  ;;  %v597_v7 = vld [vmem:[%s1976_s17 + $0x8] sm:$0xff]  ;;  %v591_v12 = vld [vmem:[%s1982_s21 + $0x10] sm:$0xff]  ;;  %1611 = vmatpush3.bf16.msra.mxu1 %v1757_v30  ;;  %s2048_s30 = scalar_lea.vmem %s2191_s2, %s1970_s27  ;;  %s2072_s23 = scalar_lea.vmem %s2174_s3, %s1970_s27 }
  0x1b   : > { %v603_v8 = vpack.c.bf16 %v597_v7, %v596_v6  ;;  %v589_v9 = vld [vmem:[%s1982_s21] sm:$0xff]  ;;  %v590_v11 = vld [vmem:[%s1982_s21 + $0x8] sm:$0xff]  ;;  %v592_v14 = vld [vmem:[%s1982_s21 + $0x18] sm:$0xff]  ;;  %1612 = vmatprep.subr.bf16.mxu1 %v1758_v31 }
  0x1c   : > { %672 = vperm.xlu1 %1739, %v589_v9   ;;  %626 = vperm.xlu0 %1738, %v589_v9   ;;  %v598_v17 = vld [vmem:[%s1976_s17 + $0x10] sm:$0xff]  ;;  %v599_v18 = vld [vmem:[%s1976_s17 + $0x18] sm:$0xff]  ;;  %v600_v19 = vld [vmem:[%s1976_s17 + $0x20] sm:$0xff] }
  0x1d   : > { %1598 = vmatprep.mubr.bf16.mxu0 %v603_v8  ;;  %1589 = vmatpush3.bf16.msra.mxu0 %v1750_v5  ;;  %v601_v20 = vld [vmem:[%s1976_s17 + $0x28] sm:$0xff]  ;;  %v593_v21 = vld [vmem:[%s1982_s21 + $0x20] sm:$0xff]  ;;  %v604_v23 = vpack.c.bf16 %v599_v18, %v598_v17  ;;  %v595_v25 = vld [vmem:[%s1982_s21 + $0x30] sm:$0xff] }
  0x1e   : > { %1590 = vmatprep.subr.bf16.mxu0 %v1751_v10  ;;  %v594_v22 = vld [vmem:[%s1982_s21 + $0x28] sm:$0xff]  ;;  %v605_v24 = vpack.c.bf16 %v601_v20, %v600_v19  ;;  %v602_v26 = vld [vmem:[%s1976_s17 + $0x30] sm:$0xff]  ;;  %1613 = vmatpush3.bf16.msra.mxu1 %v1758_v31  ;;  %v853_v20 = vld [vmem:[%s2048_s30 + $0x18] sm:$0xff]  ;;  %s524_s21 = sand.u32 1, %s1812_s25   ;;  %s1228_s25 = ssub.s32 (%p1951_p4), 13, %s1959_s19 }
  0x1f   : > { %v606_v27 = vpack.c.bf16 %v602_v26, %v602_v26  ;;  %1622 = vmatprep.subr.bf16.mxu1 %v2032_v32  ;;  %v852_v18 = vld [vmem:[%s2048_s30 + $0x10] sm:$0xff]  ;;  %s1646_s18 = smul.u32 56, %s524_s21  ;;  %p1229_p8 = scmp.lt.s32.totalorder (%p1951_p4), %s1228_s25, 7 }
  0x20   : > { %676 = vperm.xlu1 %1739, %v590_v11   ;;  %1741 = vset.pattern.permute.xlu0 %v1854_v2 }
  0x21   : > { %680 = vperm.xlu0 %1741, %v591_v12   ;;  %1591 = vmatpush3.bf16.msra.mxu0 %v1751_v10  ;;  %s2099_s22 = scalar_lea.vmem [#allocation2], %s1646_s18  }
  0x22   : > { %1592 = vmatprep.subr.bf16.mxu0 %v1752_v13 }
  0x24   : > { %1740 = vset.pattern.permute.xlu1 %v1855_v4 }
  0x25   : > { %641 = vperm.xlu1 %1740, %v592_v14   ;;  %1742 = vset.pattern.permute.xlu0 %v1855_v4 }
  0x26   : > { %1593 = vmatpush3.bf16.msra.mxu0 %v1752_v13  ;;  %631 = vperm.xlu0 %1742, %v590_v11  }
  0x27   : > { %1594 = vmatprep.subr.bf16.mxu0 %v1753_v15 }
  0x29   : > { %1743 = vset.pattern.permute.xlu1 %v1854_v2 }
  0x2a   : > { %684 = vperm.xlu1 %1743, %v592_v14   ;;  %1595 = vmatpush3.bf16.msra.mxu0 %v1753_v15 }
  0x2b   : > { %636 = vperm.xlu0 %1742, %v591_v12   ;;  %1596 = vmatprep.subr.bf16.mxu0 %v1754_v16 }
  0x2e   : > { %1744 = vset.pattern.permute.xlu1 %v1855_v4  ;;  %1597 = vmatpush3.bf16.msra.mxu0 %v1754_v16 }
  0x2f   : > { %646 = vperm.xlu1 %1744, %v593_v21   ;;  %651 = vperm.xlu0 %1742, %v594_v22  }
  0x31   : > { %1599 = vmatmul.mubr.bf16.vlgmr.msra.gmra.mrb[0].mxu0 %v604_v23 }
  0x32   : > { %1602 = vmatprep.mubr.bf16.mxu0 %v605_v24  ;;  %v851_v24 = vld [vmem:[%s2048_s30 + $0x8] sm:$0xff] }
  0x33   : > { %1745 = vset.pattern.permute.xlu1 %v1854_v2  ;;  %656 = vperm.xlu0 %1742, %v595_v25  }
  0x34   : > { %688 = vperm.xlu1 %1745, %v593_v21  }
  0x37   : > { %1746 = vset.pattern.permute.xlu0 %v1854_v2 }
  0x38   : > { %692 = vperm.xlu1 %1745, %v594_v22   ;;  %v850_v22 = vld [vmem:[%s2048_s30] sm:$0xff] }
  0x39   : > { %1603 = vmatmul.mubr.bf16.gmra.mrb[4].mxu0 %v606_v27 }
  0x3c   : > { %696 = vperm.xlu1 %1745, %v595_v25  }
  0x9b   : > { %v673_v33 = vpop.permute.xlu1 %672  ;;  %v627_v36 = vpop.permute.xlu0 %626 }
  0x9c   : > { %v703_v49 = vmul.f32 %v1506_v43, %v673_v33  ;;  %v663_v50 = vmul.f32 %v1505_v44, %v627_v36 }
  0x9e   : > { %v710_v56 = vadd.f32 %v703_v49, %v663_v50 }
  0x9f   : > { %v677_v34 = vpop.permute.xlu1 %676 }
  0xa0   : > { %v681_v38 = vpop.permute.xlu0 %680  ;;  %v704_v53 = vmul.f32 %v1506_v43, %v677_v34  ;;  %v724_v4 = vadd.f32 %v1507_v60, %v710_v56  ;;  %v1516_v56 = vld [vmem:[%s2179_s8] ss:$0 sm:$0xff] }
  0xa1   : > { %v705_v47 = vmul.f32 %v1506_v43, %v681_v38 }
  0xa4   : > { %v642_v35 = vpop.permute.xlu1 %641 }
  0xa5   : > { %v632_v40 = vpop.permute.xlu0 %631  ;;  %v666_v51 = vmul.f32 %v1505_v44, %v642_v35 }
  0xa6   : > { %v664_v54 = vmul.f32 %v1505_v44, %v632_v40 }
  0xa8   : > { %v711_v61 = vadd.f32 %v704_v53, %v664_v54 }
  0xa9   : > { %v685_v37 = vpop.permute.xlu1 %684 }
  0xaa   : > { %v637_v42 = vpop.permute.xlu0 %636  ;;  %v706_v52 = vmul.f32 %v1506_v43, %v685_v37  ;;  %v725_v12 = vadd.f32 %v1507_v60, %v711_v61 }
  0xab   : > { %v665_v48 = vmul.f32 %v1505_v44, %v637_v42 }
  0xac   : > { %v713_v59 = vadd.f32 %v706_v52, %v666_v51 }
  0xad   : > { %v712_v55 = vadd.f32 %v705_v47, %v665_v48  ;;  %v854_v47 = vld [vmem:[%s2048_s30 + $0x20] sm:$0xff]  ;;  %v855_v48 = vld [vmem:[%s2048_s30 + $0x28] sm:$0xff] }
  0xae   : > { %v647_v39 = vpop.permute.xlu1 %646  ;;  %v652_v46 = vpop.permute.xlu0 %651  ;;  %v727_v7 = vadd.f32 %v1507_v60, %v713_v59 }
  0xaf   : > { %v726_v0 = vadd.f32 %v1507_v60, %v712_v55  ;;  %v667_v1 = vmul.f32 %v1505_v44, %v647_v39  ;;  %v668_v9 = vmul.f32 %v1505_v44, %v652_v46  ;;  %v1760_v55 = vld [vmem:[%s2180_s9 + $0x8] sm:$0xff]  }
  0xb2   : > { %v657_v58 = vpop.permute.xlu0 %656 }
  0xb3   : > { %v689_v41 = vpop.permute.xlu1 %688  ;;  %v669_v63 = vmul.f32 %v1505_v44, %v657_v58  ;;  %v856_v44 = vld [vmem:[%s2048_s30 + $0x30] sm:$0xff] }
  0xb4   : > { %v707_v2 = vmul.f32 %v1506_v43, %v689_v41 }
  0xb6   : > { %v714_v17 = vadd.f32 %v707_v2, %v667_v1  ;;  %v994_v2 = vld [vmem:[%s2072_s23 + $0x18] sm:$0xff] }
  0xb7   : > { %v693_v45 = vpop.permute.xlu1 %692 }
  0xb8   : > { %v708_v8 = vmul.f32 %v1506_v43, %v693_v45  ;;  %v728_v34 = vadd.f32 %v1507_v60, %v714_v17 }
  0xba   : > { %v715_v25 = vadd.f32 %v708_v8, %v668_v9 }
  0xbb   : > { %v697_v57 = vpop.permute.xlu1 %696 }
  0xbc   : > { %v709_v62 = vmul.f32 %v1506_v43, %v697_v57  ;;  %v729_v40 = vadd.f32 %v1507_v60, %v715_v25  ;;  %v996_v25 = vld [vmem:[%s2072_s23 + $0x28] sm:$0xff] }
  0xbe   : > { %v716_v13 = vadd.f32 %v709_v62, %v669_v63 }
  0xc0   : > { %v730_v29 = vadd.f32 %v1507_v60, %v716_v13 }
 0x104   : > { %v1600_v3 = vpop.f32.mrb[0].mxu0 }
 0x105   : > { %v822_v5 = vadd.f32 %v1600_v3, %v726_v0  ;;  %v813_v6 = vpop.f32.mrb[1].mxu0  ;;  %v993_v0 = vld [vmem:[%s2072_s23 + $0x10] sm:$0xff] }
 0x106   : > { %v814_v10 = vadd.f32 %v813_v6, %v724_v4  ;;  %v1601_v11 = vpop.f32.mrb[2].mxu0  ;;  %v991_v4 = vld [vmem:[%s2072_s23] sm:$0xff]  ;;  %v992_v6 = vld [vmem:[%s2072_s23 + $0x8] sm:$0xff] }
 0x107   : > { %v845_v14 = vmax.f32 %v822_v5, 0.0  ;;  %v825_v15 = vadd.f32 %v1601_v11, %v727_v7  ;;  %v816_v16 = vpop.f32.mrb[3].mxu0 }
 0x108   : > { %v843_v19 = vmax.f32 %v814_v10, 0.0  ;;  %v817_v21 = vadd.f32 %v816_v16, %v725_v12 }
 0x109   : > { %v846_v23 = vmax.f32 %v825_v15, 0.0  ;;  %v859_v27 = vadd.f32 %v852_v18, %v845_v14 }
 0x10a   : > { %v844_v26 = vmax.f32 %v817_v21, 0.0  ;;  %v857_v30 = vadd.f32 %v850_v22, %v843_v19  ;;  %v997_v21 = vld [vmem:[%s2072_s23 + $0x30] sm:$0xff] }
 0x10b   : > { %v860_v28 = vadd.f32 %v853_v20, %v846_v23 }
 0x10c   : > { %v858_v31 = vadd.f32 %v851_v24, %v844_v26  ;;  %v1604_v33 = vpop.f32.mrb[4].mxu0  ;;  %v995_v24 = vld [vmem:[%s2072_s23 + $0x20] sm:$0xff]  ;;  %s1550_s23 = smul.u32 (%p1951_p4), 56, %s1939_s28 }
 0x10d   : > { %v865_v35 = vpack.c.bf16 %v860_v28, %v859_v27  ;;  %v838_v36 = vadd.f32 %v1604_v33, %v730_v29  ;;  %v829_v37 = vpop.f32.mrb[5].mxu0  ;;  %v1761_v33 = vld [vmem:[%s2182_s11] sm:$0xff]  }
 0x10e   : > { %v830_v38 = vadd.f32 %v829_v37, %v728_v34  ;;  %v1605_v39 = vpop.f32.mrb[6].mxu0  ;;  %v864_v41 = vpack.c.bf16 %v858_v31, %v857_v30  ;;  %1634 = vmatprep.subr.bf16.mxu0 %v1761_v33  ;;  %v1525_v34 = vld [vmem:[%s2181_s10] ss:$0 sm:$0xff]  ;;  %s2122_s30 = scalar_lea.vmem (%p1951_p4), %s2184_s13, %s1550_s23  }
 0x10f   : > { %v849_v42 = vmax.f32 %v838_v36, 0.0  ;;  %v832_v43 = vpop.f32.mrb[7].mxu0  ;;  %1635 = vmatpush3.bf16.msra.mxu0 %v1761_v33 }
 0x110   : > { %v847_v45 = vmax.f32 %v830_v38, 0.0  ;;  %v833_v46 = vadd.f32 %v832_v43, %v729_v40  ;;  %1614 = vmatprep.mubr.msk.bf16.mxu1 %vm907_vm0, %v864_v41 }
 0x111   : > { %1615 = vmatmul.mubr.msk.bf16.vlgmr.msra.gmra.mrb[0].mxu1 %vm907_vm0, %v865_v35  ;;  %v863_v50 = vadd.f32 %v856_v44, %v849_v42 }
 0x112   : > { %v848_v49 = vmax.f32 %v833_v46, 0.0  ;;  %1623 = vmatpush3.bf16.msra.mxu1 %v2032_v32  ;;  %v861_v51 = vadd.f32 %v854_v47, %v847_v45 }
 0x113   : > { %v867_v54 = vpack.c.bf16 %v863_v50, %v863_v50  ;;  %1624 = vmatprep.subr.bf16.mxu1 %v1760_v55 }
 0x114   : > { %v862_v52 = vadd.f32 %v855_v48, %v848_v49 }
 0x116   : > { %v866_v53 = vpack.c.bf16 %v862_v52, %v861_v51  ;;  %1625 = vmatpush3.bf16.msra.mxu1 %v1760_v55 }
 0x117   : > { %1644 = vmatprep.subr.bf16.mxu1 %v1761_v33 }
 0x118   : > { %1618 = vmatprep.mubr.msk.bf16.mxu1 %vm907_vm0, %v866_v53 }
 0x119   : > { %1619 = vmatmul.mubr.msk.bf16.gmra.mrb[4].mxu1 %vm907_vm0, %v867_v54 }
 0x1e4   : > { %v1616_v32 = vpop.f32.mrb[0].mxu1 }
 0x1e5   : > { %v963_v57 = vadd.f32 %v1616_v32, %v1516_v56  ;;  %v954_v58 = vpop.f32.mrb[1].mxu1 }
 0x1e6   : > { %v955_v59 = vadd.f32 %v1516_v56, %v954_v58  ;;  %v1617_v60 = vpop.f32.mrb[2].mxu1 }
 0x1e7   : > { %v986_v61 = vmax.f32 %v963_v57, 0.0  ;;  %v966_v62 = vadd.f32 %v1617_v60, %v1516_v56  ;;  %v957_v63 = vpop.f32.mrb[3].mxu1  ;;  %v1532_v60 = vld [vmem:[%s2183_s12] ss:$0 sm:$0xff] }
 0x1e8   : > { %v984_v1 = vmax.f32 %v955_v59, 0.0  ;;  %v958_v3 = vadd.f32 %v1516_v56, %v957_v63 }
 0x1e9   : > { %v987_v5 = vmax.f32 %v966_v62, 0.0  ;;  %v1000_v8 = vadd.f32 %v993_v0, %v986_v61 }
 0x1ea   : > { %v985_v7 = vmax.f32 %v958_v3, 0.0  ;;  %v998_v10 = vadd.f32 %v991_v4, %v984_v1 }
 0x1eb   : > { %v1001_v9 = vadd.f32 %v994_v2, %v987_v5 }
 0x1ec   : > { %v999_v11 = vadd.f32 %v992_v6, %v985_v7  ;;  %v1620_v12 = vpop.f32.mrb[4].mxu1 }
 0x1ed   : > { %v1006_v13 = vpack.c.bf16 %v1001_v9, %v1000_v8  ;;  %v979_v14 = vadd.f32 %v1620_v12, %v1516_v56  ;;  %v970_v15 = vpop.f32.mrb[5].mxu1 }
 0x1ee   : > { %v1005_v16 = vpack.c.bf16 %v999_v11, %v998_v10  ;;  %v971_v17 = vadd.f32 %v1516_v56, %v970_v15  ;;  %v1621_v18 = vpop.f32.mrb[6].mxu1 }
 0x1ef   : > { %v990_v19 = vmax.f32 %v979_v14, 0.0  ;;  %v973_v20 = vpop.f32.mrb[7].mxu1 }
 0x1f0   : > { %v988_v22 = vmax.f32 %v971_v17, 0.0  ;;  %v974_v23 = vadd.f32 %v1516_v56, %v973_v20  ;;  %1626 = vmatprep.mubr.msk.bf16.mxu1 %vm1032_vm1, %v1005_v16 }
 0x1f1   : > { %1627 = vmatmul.mubr.msk.bf16.vlgmr.msra.gmra.mrb[8].mxu1 %vm1032_vm1, %v1006_v13  ;;  %v1004_v27 = vadd.f32 %v997_v21, %v990_v19 }
 0x1f2   : > { %v989_v26 = vmax.f32 %v974_v23, 0.0  ;;  %v1002_v28 = vadd.f32 %v995_v24, %v988_v22  ;;  %1645 = vmatpush3.bf16.msra.mxu1 %v1761_v33 }
 0x1f3   : > { %v1008_v31 = vpack.c.bf16 %v1004_v27, %v1004_v27 }
 0x1f4   : > { %v1003_v29 = vadd.f32 %v996_v25, %v989_v26 }
 0x1f6   : > { %v1007_v30 = vpack.c.bf16 %v1003_v29, %v1002_v28 }
 0x1f8   : > { %1630 = vmatprep.mubr.msk.bf16.mxu1 %vm1032_vm1, %v1007_v30 }
 0x1f9   : > { %1631 = vmatmul.mubr.msk.bf16.gmra.mrb[12].mxu1 %vm1032_vm1, %v1008_v31 }
 0x2c4   : > { %v1628_v35 = vpop.f32.mrb[8].mxu1 }
 0x2c5   : > { %v1088_v36 = vadd.f32 %v1628_v35, %v1525_v34  ;;  %v1079_v37 = vpop.f32.mrb[9].mxu1 }
 0x2c6   : > { %v1080_v38 = vadd.f32 %v1525_v34, %v1079_v37  ;;  %v1629_v39 = vpop.f32.mrb[10].mxu1 }
 0x2c7   : > { %v1091_v40 = vadd.f32 %v1629_v39, %v1525_v34  ;;  %v1082_v41 = vpop.f32.mrb[11].mxu1  ;;  %v1111_v43 = vmax.f32 %v1088_v36, 0.0 }
 0x2c8   : > { %v1083_v42 = vadd.f32 %v1525_v34, %v1082_v41  ;;  %v1109_v45 = vmax.f32 %v1080_v38, 0.0 }
 0x2c9   : > { %v1112_v44 = vmax.f32 %v1091_v40, 0.0 }
 0x2ca   : > { %v1110_v46 = vmax.f32 %v1083_v42, 0.0 }
 0x2cb   : > { %v1117_v47 = vpack.c.bf16 %v1112_v44, %v1111_v43 }
 0x2cc   : > { %v1116_v48 = vpack.c.bf16 %v1110_v46, %v1109_v45  ;;  %v1632_v49 = vpop.f32.mrb[12].mxu1 }
 0x2cd   : > { %v1104_v50 = vadd.f32 %v1632_v49, %v1525_v34  ;;  %v1095_v51 = vpop.f32.mrb[13].mxu1 }
 0x2ce   : > { %v1096_v52 = vadd.f32 %v1525_v34, %v1095_v51  ;;  %v1633_v53 = vpop.f32.mrb[14].mxu1  ;;  %1636 = vmatprep.mubr.msk.bf16.mxu0 %vm1135_vm2, %v1116_v48 }
 0x2cf   : > { %v1098_v54 = vpop.f32.mrb[15].mxu1  ;;  %1637 = vmatmul.mubr.msk.bf16.vlgmr.msra.gmra.mrb[8].mxu0 %vm1135_vm2, %v1117_v47  ;;  %v1115_v56 = vmax.f32 %v1104_v50, 0.0 }
 0x2d0   : > { %v1099_v55 = vadd.f32 %v1525_v34, %v1098_v54  ;;  %v1113_v32 = vmax.f32 %v1096_v52, 0.0 }
 0x2d1   : > { %v1119_v59 = vpack.c.bf16 %v1115_v56, %v1115_v56 }
 0x2d2   : > { %v1114_v57 = vmax.f32 %v1099_v55, 0.0 }
 0x2d4   : > { %v1118_v58 = vpack.c.bf16 %v1114_v57, %v1113_v32 }
 0x2d6   : > { %1640 = vmatprep.mubr.msk.bf16.mxu1 %vm1135_vm2, %v1118_v58 }
 0x2d7   : > { %1641 = vmatmul.mubr.msk.bf16.vlgmr.msra.gmra.mrb[16].mxu1 %vm1135_vm2, %v1119_v59 }
 0x3a2   : > { %v1638_v61 = vpop.f32.mrb[8].mxu0 }
 0x3a3   : > { %v1191_v62 = vadd.f32 %v1638_v61, %v1532_v60  ;;  %v1182_v63 = vpop.f32.mrb[9].mxu0 }
 0x3a4   : > { %v1183_v0 = vadd.f32 %v1532_v60, %v1182_v63  ;;  %v1639_v1 = vpop.f32.mrb[10].mxu0 }
 0x3a5   : > { %1215 = vst.msk [vmem:[%s2099_s22 + $0x10] sm:$0xff] %vm1212_vm3, %v1191_v62  ;;  %v1194_v2 = vadd.f32 %v1639_v1, %v1532_v60  ;;  %v1185_v3 = vpop.f32.mrb[11].mxu0 }
 0x3a6   : > { %1213 = vst.msk [vmem:[%s2099_s22] sm:$0xff] %vm1212_vm3, %v1183_v0  ;;  %v1186_v4 = vadd.f32 %v1532_v60, %v1185_v3 }
 0x3a7   : > { %1216 = vst.msk [vmem:[%s2099_s22 + $0x18] sm:$0xff] %vm1212_vm3, %v1194_v2 }
 0x3a8   : > { %1214 = vst.msk [vmem:[%s2099_s22 + $0x8] sm:$0xff] %vm1212_vm3, %v1186_v4 }
 0x3aa   : > { %v1642_v5 = vpop.f32.mrb[16].mxu1  ;;  %1226 = sbr.rel (!%p1951_p4) target bundleno = 1006 (0x3ee), region = 76 }
 0x3ab   : > { %v1207_v6 = vadd.f32 %v1642_v5, %v1532_v60  ;;  %v1198_v7 = vpop.f32.mrb[17].mxu1 }
 0x3ac   : > { %v1199_v8 = vadd.f32 %v1532_v60, %v1198_v7  ;;  %v1643_v9 = vpop.f32.mrb[18].mxu1 }
 0x3ad   : > { %1219 = vst.msk [vmem:[%s2099_s22 + $0x30] sm:$0xff] %vm1212_vm3, %v1207_v6  ;;  %v1201_v10 = vpop.f32.mrb[19].mxu1 }
 0x3ae   : > { %1217 = vst.msk [vmem:[%s2099_s22 + $0x20] sm:$0xff] %vm1212_vm3, %v1199_v8  ;;  %v1202_v11 = vadd.f32 %v1532_v60, %v1201_v10 }
 0x3b0   : > { %1218 = vst.msk [vmem:[%s2099_s22 + $0x28] sm:$0xff] %vm1212_vm3, %v1202_v11 }
 0x3b1   : > { %s2199_s25 = smov (!%p1229_p8, %s1228_s25), 7 }
 0x3b2   : > { %s1538_s14 = sshll.u32 %s2199_s25, 7 }
 0x3b3   : > { %p1541_p9 = scmp.eq.s32.totalorder %s1538_s14, 0 }
 0x3b4   : > { %1762 = sdivrem.u32 (!%p1541_p9), %s2199_s25, 7 }
 0x3b5   : > { %1237 = sbr.rel (%p1541_p9) target bundleno = 1006 (0x3ee), region = 80 }
 0x3bd   : > { %s2128_s16 = spop.drf %1762 }
 0x3be   : > { %p1542_p10 = scmp.le.s32.totalorder %s2128_s16, 0 }
 0x3bf   : > { %s2192_s28 = smov (!%p1542_p10), %s2122_s30  ;;  %s2193_s19 = smov (!%p1542_p10), %s2099_s22 }
 0x3c0   : > { %1435 = sbr.rel (%p1542_p10) target bundleno = 977 (0x3d1), region = 165  ;;  %s2137_s21 = smov (!%p1542_p10), 0  }
 0x3c1   : > { %s2139_s18 = smov (!%p1542_p10), 0  }
 0x3c7 LB: >> { %v1313_v12 = vld [vmem:[%s1828_s19] sm:$0xff]  ;;  %v1315_v13 = vld [vmem:[%s1828_s19 + $0x8] sm:$0xff]  ;;  %v1317_v14 = vld [vmem:[%s1828_s19 + $0x10] sm:$0xff]  ;;  %s1327_s17 = sadd.s32 1, %s1832_s21  ;;  %s1307_s18 = sadd.s32 1, %s1836_s18   ;;  %s1836_s18 = sphi %s2139_s18, %s1307_s18   ;;  %s1832_s21 = sphi %s2137_s21, %s2194_s21   ;;  %s1828_s19 = sphi %s2193_s19, %s1332_s19   ;;  %s1824_s28 = sphi %s2192_s28, %s1333_s28  }
 0x3c8   : >> { %1314 = vst [vmem:[%s1824_s28] sm:$0xff] %v1313_v12  ;;  %1316 = vst [vmem:[%s1824_s28 + $0x8] sm:$0xff] %v1315_v13  ;;  %v1319_v15 = vld [vmem:[%s1828_s19 + $0x18] sm:$0xff]  ;;  %v1321_v16 = vld [vmem:[%s1828_s19 + $0x20] sm:$0xff]  ;;  %p1328_p11 = scmp.ge.s32.totalorder %s1327_s17, %s2128_s16  ;;  %p1306_p12 = scmp.ge.s32.totalorder %s1307_s18, %s2128_s16 }
 0x3c9   : >> { %1318 = vst [vmem:[%s1824_s28 + $0x10] sm:$0xff] %v1317_v14  ;;  %v1323_v17 = vld [vmem:[%s1828_s19 + $0x28] sm:$0xff]  ;;  %1320 = vst [vmem:[%s1824_s28 + $0x18] sm:$0xff] %v1319_v15  ;;  %v1325_v18 = vld [vmem:[%s1828_s19 + $0x30] sm:$0xff] }
 0x3ca   : >> { %1322 = vst [vmem:[%s1824_s28 + $0x20] sm:$0xff] %v1321_v16  ;;  %1324 = vst [vmem:[%s1824_s28 + $0x28] sm:$0xff] %v1323_v17  ;;  %s2201_s17 = smov (%p1328_p11, %s1327_s17), 0  ;;  %1309 = sbr.rel (!%p1306_p12) target bundleno = 967 (0x3c7), region = 171 }
 0x3cb   : >> { %1326 = vst [vmem:[%s1824_s28 + $0x30] sm:$0xff] %v1325_v18  ;;  %s1330_s20 = smul.u32 56, %s2201_s17  ;;  %s2194_s21 = smov %s2201_s17 }
 0x3cd   : >> { %s1332_s19 = scalar_lea.vmem %s2099_s22, %s1330_s20 [#allocation2]   ;;  %s1333_s28 = scalar_lea.vmem %s2122_s30, %s1330_s20  }
 0x3d1 PF: > { %1764 = sdivrem.u32 %s2199_s25, 7 }
 0x3d2   : > { %s1543_s23 = smul.u32 56, %s2128_s16 }
 0x3d4   : > { %s1338_s27 = scalar_lea.vmem %s2099_s22, %s1543_s23 [#allocation2]   ;;  %s1340_s24 = scalar_lea.vmem %s2122_s30, %s1543_s23  }
 0x3da   : > { %s1765_s14 = spop.drf %1764 }
 0x3db   : > { %p1545_p13 = scmp.le.s32.totalorder %s1765_s14, 0 }
 0x3dc   : > { %s1838_s20 = smov (!%p1545_p13), %s1340_s24   ;;  %s1842_s0 = smov (!%p1545_p13), %s1338_s27  }
 0x3dd   : > { %1449 = sbr.rel (%p1545_p13) target bundleno = 1006 (0x3ee), region = 176  ;;  %s1846_s1 = smov (!%p1545_p13), 0  }
 0x3de   : > { %s1850_s2 = smov (!%p1545_p13), 0  }
 0x3e4 LB: >> { %v1350_v19 = vld [vmem:[%s1844_s0] sm:$0xff]  ;;  %s1352_s28 = sadd.s32 1, %s1848_s1  ;;  %s1344_s2 = sadd.s32 1, %s1852_s2   ;;  %s1852_s2 = sphi %s1850_s2, %s1344_s2   ;;  %s1848_s1 = sphi %s1846_s1, %s1847_s1   ;;  %s1844_s0 = sphi %s1842_s0, %s1357_s0   ;;  %s1840_s20 = sphi %s1838_s20, %s1358_s20  }
 0x3e5   : >> { %1351 = vst [vmem:[%s1840_s20] sm:$0xff] %v1350_v19  ;;  %p1353_p0 = scmp.ge.s32.totalorder %s1352_s28, %s1765_s14  ;;  %p1343_p1 = scmp.ge.s32.totalorder %s1344_s2, %s1765_s14 }
 0x3e7   : >> { %s2203_s28 = smov (%p1353_p0, %s1352_s28), 0  ;;  %1346 = sbr.rel (!%p1343_p1) target bundleno = 996 (0x3e4), region = 182 }
 0x3e8   : >> { %s1546_s22 = sshll.u32 %s2203_s28, 3  ;;  %s1847_s1 = smov %s2203_s28  }
 0x3e9   : >> { %s1357_s0 = scalar_lea.vmem %s1338_s27, %s1546_s22 [#allocation2]   ;;  %s1358_s20 = scalar_lea.vmem %s1340_s24, %s1546_s22  }
 0x3ee PF: > { %p20_p2 = scmp.ge.s32.totalorder %s1941_s29, 4   ;;  %s2195_s25 = smov %s1816_s26 }
 0x3ef   : > { %s2196_s26 = smov %s1949_s15  ;;  %s2197_s27 = smov %s1941_s29 }
 0x3f0   :  { %22 = sbr.rel (!%p20_p2) target bundleno = 6 (0x6), region = 193 }

</bundles_post_ra>
